<compile_context>
chip_gen: v7x
topology: tpu7x:2x2x1
jax: 0.10.0
libtpu: 0.0.40
codegen_flags: <defaults>
</compile_context>

<pallas_src>
import functools

import jax
import jax.numpy as jnp
from jax.experimental import pallas as pl
from jax.experimental.pallas import tpu as pltpu


_TILE_BYTES = 4 * 1024 * 1024  # per-tile HBM->VMEM budget (double-buffered by Pallas)


def _pow_beta(d, beta):
    """|d| ** beta with the cheap common cases special-cased."""
    if beta == 1:
        return jnp.abs(d)
    if beta == 2:
        return d * d                      # no abs needed for even powers
    if isinstance(beta, int) and beta > 0 and beta % 2 == 0:
        return (d * d) ** (beta // 2)
    return jnp.abs(d) ** beta             # generic fallback


def _tv_loss_kernel(x_ref, o_ref, acc_ref, prev_row_ref, *,
                    beta, h, w, th, inv_col, inv_row, tail):
    i = pl.program_id(0)

    @pl.when(i == 0)
    def _init():
        acc_ref[...] = jnp.zeros_like(acc_ref)

    x = x_ref[...].astype(jnp.float32)          # (th, w)

    # Seam row-diff between the previous tile's last row and this tile's first
    # row (counted exactly once; both rows are valid whenever this tile exists).
    @pl.when(i > 0)
    def _seam():
        d = prev_row_ref[...] - x[0:1, :]
        acc_ref[...] = acc_ref[...] + inv_row * jnp.sum(_pow_beta(d, beta),
                                                        keepdims=True)

    # 1-D masks: lane mask for the column diffs, sublane mask for the row diffs.
    lane = jax.lax.broadcasted_iota(jnp.int32, (1, w), 1)
    col_mask = lane < (w - 1)
    sub = jax.lax.broadcasted_iota(jnp.int32, (th, 1), 0)
    row_mask = sub < (th - 1)
    if tail:  # ragged last tile: also drop rows that fall past the image.
        g = i * th + sub
        col_mask = jnp.logical_and(col_mask, g < h)
        row_mask = jnp.logical_and(row_mask, g < (h - 1))

    # Shift-by-one neighbours via XLU roll (no unaligned slices / VMEM copies).
    dcol = x - pltpu.roll(x, shift=w - 1, axis=1)   # dcol[:, j] = x[:, j] - x[:, j+1]
    drow = x - pltpu.roll(x, shift=th - 1, axis=0)  # drow[r, :] = x[r, :] - x[r+1, :]

    col_part = jnp.sum(jnp.where(col_mask, _pow_beta(dcol, beta), 0.0),
                       keepdims=True)
    row_part = jnp.sum(jnp.where(row_mask, _pow_beta(drow, beta), 0.0),
                       keepdims=True)
    acc_ref[...] = acc_ref[...] + inv_col * col_part + inv_row * row_part

    # Carry this tile's last row for the next tile's seam.
    prev_row_ref[...] = x[th - 1:th, :]

    @pl.when(i == pl.num_programs(0) - 1)
    def _finalize():
        o_ref[...] = acc_ref[...]


def _pick_tile_rows(h, w, itemsize):
    rows_budget = _TILE_BYTES // max(1, w * itemsize)
    if rows_budget >= h:
        return int(h)                          # single tile: block == full array
    return int(max(8, (min(rows_budget, h) // 8) * 8))


def total_variation_loss(x: jax.Array, beta=2, tile_rows=None) -> jax.Array:
    """Pallas TPU implementation of TotalVariationLoss.forward for 2-D x."""
    assert x.ndim == 2, "layout: x must be [H, W]"
    h, w = x.shape
    if isinstance(beta, float) and float(beta).is_integer():
        beta = int(beta)                       # keep float beta away from pow/EUP

    itemsize = jnp.dtype(x.dtype).itemsize
    th = _pick_tile_rows(h, w, itemsize) if tile_rows is None else int(tile_rows)
    assert th == h or (th % 8 == 0 and 0 < th < h), \
        "tile_rows must equal H or be a multiple of 8 smaller than H"

    num_tiles = pl.cdiv(h, th)
    tail = (h % th) != 0
    # Static reciprocals (hoisted out of the kernel body).  Degenerate shapes
    # (H==1 or W==1) give NaN, matching torch.mean over an empty diff.
    inv_col = 1.0 / (h * (w - 1)) if w > 1 else float("nan")
    inv_row = 1.0 / ((h - 1) * w) if h > 1 else float("nan")

    kernel = functools.partial(
        _tv_loss_kernel, beta=beta, h=h, w=w, th=th,
        inv_col=inv_col, inv_row=inv_row, tail=tail)

    out = pl.pallas_call(
        kernel,
        out_shape=jax.ShapeDtypeStruct((1, 1), jnp.float32),
        grid=(num_tiles,),
        in_specs=[pl.BlockSpec((th, w), lambda i: (i, 0))],
        # (1,1) output written once under pl.when(last): writeback is a single
        # 4-byte store per call, so an SMEM-scalar output buys nothing
        # measurable here and the all-vector path is the safest lowering.
        out_specs=pl.BlockSpec((1, 1), lambda i: (0, 0)),
        scratch_shapes=[
            pltpu.VMEM((1, 1), jnp.float32),   # running (pre-scaled) loss
            pltpu.VMEM((1, w), jnp.float32),   # previous tile's last row (seam carry)
        ],
        compiler_params=pltpu.CompilerParams(
            # Sequential row sweep: the seam carry + accumulator require it.
            # TODO(synk): a v7x megacore split (2 TCs) needs per-core partial
            # outputs plus a halo fetch instead of the carry; omitted to keep
            # the seam handling exact and simple.
            dimension_semantics=("arbitrary",),
            vmem_limit_bytes=48 * 1024 * 1024,
        ),
    )(x)
    return out[0, 0]


def _reference(x: jax.Array, beta=2) -> jax.Array:
    x = x.astype(jnp.float32)
    x_diff = jnp.abs(x[:, :-1] - x[:, 1:]) ** beta
    y_diff = jnp.abs(x[:-1, :] - x[1:, :]) ** beta
    return jnp.mean(x_diff) + jnp.mean(y_diff)


if __name__ == "__main__":
    key = jax.random.PRNGKey(0)
    k1, k2 = jax.random.split(key)

    # Case 1: the module's natural tiny case (single tile, W << 128).
    x1 = jax.random.normal(k1, (16, 16), dtype=jnp.float32)
    out1 = jax.block_until_ready(total_variation_loss(x1, beta=2))
    ref1 = jax.block_until_ready(_reference(x1, beta=2))
    assert jnp.allclose(out1, ref1, rtol=1e-4, atol=1e-5), (out1, ref1)

    # Case 2: multi-tile grid with a ragged last tile (exercises the seam carry
    # and the tail masks: 40 rows, 16-row tiles -> 3 tiles, last one partial).
    x2 = jax.random.normal(k2, (40, 128), dtype=jnp.float32)
    out2 = jax.block_until_ready(total_variation_loss(x2, beta=2, tile_rows=16))
    ref2 = jax.block_until_ready(_reference(x2, beta=2))
    assert jnp.allclose(out2, ref2, rtol=1e-4, atol=1e-5), (out2, ref2)

    # Case 3: beta=1 path.
    out3 = jax.block_until_ready(total_variation_loss(x2, beta=1, tile_rows=16))
    ref3 = jax.block_until_ready(_reference(x2, beta=1))
    assert jnp.allclose(out3, ref3, rtol=1e-4, atol=1e-5), (out3, ref3)

    print("KERNEL_OK")
</pallas_src>

<mosaic_0001>
module attributes {stable_mosaic.version = 11 : i64} {
  func.func @_tv_loss_kernel(%arg0: i32, %arg1: memref<16x16xf32, #tpu.memory_space<vmem>>, %arg2: memref<1x1xf32, #tpu.memory_space<vmem>>, %arg3: memref<1x1xf32, #tpu.memory_space<vmem>>, %arg4: memref<1x16xf32, #tpu.memory_space<vmem>>) attributes {dimension_semantics = [#tpu.dimension_semantics<arbitrary>], iteration_bounds = array<i64: 1>, scalar_prefetch = 0 : i64, scratch_operands = 2 : i64, tpu.core_type = #tpu.core_type<tc>, window_params = [{transform_indices = @transform_0, window_bounds = array<i64: 16, 16>}, {pipeline_mode = #tpu.pipeline_mode<synchronous>, transform_indices = @transform_1, window_bounds = array<i64: 1, 1>}]} {
    %c0_i32 = arith.constant 0 : i32
    %0 = arith.cmpi eq, %arg0, %c0_i32 : i32
    %1 = arith.extui %0 : i1 to i32
    %c0_i32_0 = arith.constant 0 : i32
    %2 = arith.cmpi ne, %1, %c0_i32_0 : i32
    scf.if %2 {
      %cst_20 = arith.constant 0.000000e+00 : f32
      %50 = vector.broadcast %cst_20 : f32 to vector<1x1xf32>
      %c0_21 = arith.constant 0 : index
      %c0_22 = arith.constant 0 : index
      %51 = vector.load %arg3[%c0_21, %c0_22] : memref<1x1xf32, #tpu.memory_space<vmem>>, vector<1x1xf32>
      tpu.vector_store %arg3[%c0_21, %c0_22], %50 {strides = array<i32>} : memref<1x1xf32, #tpu.memory_space<vmem>>, vector<1x1xf32>,
    } else {
    }
    %c0 = arith.constant 0 : index
    %c0_1 = arith.constant 0 : index
    %3 = vector.load %arg1[%c0, %c0_1] : memref<16x16xf32, #tpu.memory_space<vmem>>, vector<16x16xf32>
    %c0_i32_2 = arith.constant 0 : i32
    %4 = arith.cmpi sgt, %arg0, %c0_i32_2 : i32
    %5 = arith.extui %4 : i1 to i32
    %c0_i32_3 = arith.constant 0 : i32
    %6 = arith.cmpi ne, %5, %c0_i32_3 : i32
    scf.if %6 {
      %c0_20 = arith.constant 0 : index
      %c0_21 = arith.constant 0 : index
      %50 = vector.load %arg4[%c0_20, %c0_21] : memref<1x16xf32, #tpu.memory_space<vmem>>, vector<1x16xf32>
      %51 = vector.extract_strided_slice %3 {offsets = [0, 0], sizes = [1, 16], strides = [1, 1]} : vector<16x16xf32> to vector<1x16xf32>
      %52 = arith.subf %50, %51 : vector<1x16xf32>
      %c0_22 = arith.constant 0 : index
      %c0_23 = arith.constant 0 : index
      %53 = vector.load %arg3[%c0_22, %c0_23] : memref<1x1xf32, #tpu.memory_space<vmem>>, vector<1x1xf32>
      %54 = arith.mulf %52, %52 : vector<1x16xf32>
      %55 = vector.shape_cast %54 : vector<1x16xf32> to vector<1x1x16xf32>
      %cst_24 = arith.constant dense<0.000000e+00> : vector<1xf32>
      %56 = vector.multi_reduction <add>, %55, %cst_24 [1, 2] : vector<1x1x16xf32> to vector<1xf32>
      %57 = vector.shape_cast %56 : vector<1xf32> to vector<1x1x1xf32>
      %58 = vector.extract %57[0, 0, 0] : f32 from vector<1x1x1xf32>
      %59 = vector.broadcast %58 : f32 to vector<1x1xf32>
      %cst_25 = arith.constant 0.00416666688 : f32
      %60 = vector.broadcast %cst_25 : f32 to vector<1x1xf32>
      %61 = arith.mulf %60, %59 : vector<1x1xf32>
      %62 = arith.addf %53, %61 : vector<1x1xf32>
      %c0_26 = arith.constant 0 : index
      %c0_27 = arith.constant 0 : index
      %63 = vector.load %arg3[%c0_26, %c0_27] : memref<1x1xf32, #tpu.memory_space<vmem>>, vector<1x1xf32>
      tpu.vector_store %arg3[%c0_26, %c0_27], %62 {strides = array<i32>} : memref<1x1xf32, #tpu.memory_space<vmem>>, vector<1x1xf32>,
    } else {
    }
    %7 = tpu.iota {dimensions = array<i32: 1>} : vector<1x16xi32>
    %c15_i32 = arith.constant 15 : i32
    %8 = vector.broadcast %c15_i32 : i32 to vector<1x16xi32>
    %9 = arith.cmpi slt, %7, %8 : vector<1x16xi32>
    %10 = tpu.iota {dimensions = array<i32: 0>} : vector<16x1xi32>
    %c15_i32_4 = arith.constant 15 : i32
    %11 = vector.broadcast %c15_i32_4 : i32 to vector<16x1xi32>
    %12 = arith.cmpi slt, %10, %11 : vector<16x1xi32>
    %c15_i32_5 = arith.constant 15 : i32
    %13 = tpu.dynamic_rotate %3 by %c15_i32_5 dim 1 : vector<16x16xf32>, i32 -> vector<16x16xf32>
    %14 = arith.subf %3, %13 : vector<16x16xf32>
    %c15_i32_6 = arith.constant 15 : i32
    %15 = tpu.dynamic_rotate %3 by %c15_i32_6 dim 0 : vector<16x16xf32>, i32 -> vector<16x16xf32>
    %16 = arith.subf %3, %15 : vector<16x16xf32>
    %17 = arith.mulf %14, %14 : vector<16x16xf32>
    %cst = arith.constant 0.000000e+00 : f32
    %18 = vector.shape_cast %9 : vector<1x16xi1> to vector<1x16xi1>
    %19 = vector.broadcast %18 : vector<1x16xi1> to vector<16x16xi1>
    %20 = vector.broadcast %cst : f32 to vector<16x16xf32>
    %21 = arith.select %19, %17, %20 : vector<16x16xi1>, vector<16x16xf32>
    %22 = vector.shape_cast %21 : vector<16x16xf32> to vector<1x16x16xf32>
    %cst_7 = arith.constant dense<0.000000e+00> : vector<1xf32>
    %23 = vector.multi_reduction <add>, %22, %cst_7 [1, 2] : vector<1x16x16xf32> to vector<1xf32>
    %24 = vector.shape_cast %23 : vector<1xf32> to vector<1x1x1xf32>
    %25 = vector.extract %24[0, 0, 0] : f32 from vector<1x1x1xf32>
    %26 = vector.broadcast %25 : f32 to vector<1x1xf32>
    %27 = arith.mulf %16, %16 : vector<16x16xf32>
    %cst_8 = arith.constant 0.000000e+00 : f32
    %28 = vector.shape_cast %12 : vector<16x1xi1> to vector<16x1xi1>
    %29 = vector.broadcast %28 : vector<16x1xi1> to vector<16x16xi1>
    %30 = vector.broadcast %cst_8 : f32 to vector<16x16xf32>
    %31 = arith.select %29, %27, %30 : vector<16x16xi1>, vector<16x16xf32>
    %32 = vector.shape_cast %31 : vector<16x16xf32> to vector<1x16x16xf32>
    %cst_9 = arith.constant dense<0.000000e+00> : vector<1xf32>
    %33 = vector.multi_reduction <add>, %32, %cst_9 [1, 2] : vector<1x16x16xf32> to vector<1xf32>
    %34 = vector.shape_cast %33 : vector<1xf32> to vector<1x1x1xf32>
    %35 = vector.extract %34[0, 0, 0] : f32 from vector<1x1x1xf32>
    %36 = vector.broadcast %35 : f32 to vector<1x1xf32>
    %c0_10 = arith.constant 0 : index
    %c0_11 = arith.constant 0 : index
    %37 = vector.load %arg3[%c0_10, %c0_11] : memref<1x1xf32, #tpu.memory_space<vmem>>, vector<1x1xf32>
    %cst_12 = arith.constant 0.00416666688 : f32
    %38 = vector.broadcast %cst_12 : f32 to vector<1x1xf32>
    %39 = arith.mulf %38, %26 : vector<1x1xf32>
    %40 = arith.addf %37, %39 : vector<1x1xf32>
    %cst_13 = arith.constant 0.00416666688 : f32
    %41 = vector.broadcast %cst_13 : f32 to vector<1x1xf32>
    %42 = arith.mulf %41, %36 : vector<1x1xf32>
    %43 = arith.addf %40, %42 : vector<1x1xf32>
    %c0_14 = arith.constant 0 : index
    %c0_15 = arith.constant 0 : index
    %44 = vector.load %arg3[%c0_14, %c0_15] : memref<1x1xf32, #tpu.memory_space<vmem>>, vector<1x1xf32>
    tpu.vector_store %arg3[%c0_14, %c0_15], %43 {strides = array<i32>} : memref<1x1xf32, #tpu.memory_space<vmem>>, vector<1x1xf32>,
    %45 = vector.extract_strided_slice %3 {offsets = [15, 0], sizes = [1, 16], strides = [1, 1]} : vector<16x16xf32> to vector<1x16xf32>
    %c0_16 = arith.constant 0 : index
    %c0_17 = arith.constant 0 : index
    %46 = vector.load %arg4[%c0_16, %c0_17] : memref<1x16xf32, #tpu.memory_space<vmem>>, vector<1x16xf32>
    tpu.vector_store %arg4[%c0_16, %c0_17], %45 {strides = array<i32>} : memref<1x16xf32, #tpu.memory_space<vmem>>, vector<1x16xf32>,
    %c0_i32_18 = arith.constant 0 : i32
    %47 = arith.cmpi eq, %arg0, %c0_i32_18 : i32
    %48 = arith.extui %47 : i1 to i32
    %c0_i32_19 = arith.constant 0 : i32
    %49 = arith.cmpi ne, %48, %c0_i32_19 : i32
    scf.if %49 {
      %c0_20 = arith.constant 0 : index
      %c0_21 = arith.constant 0 : index
      %50 = vector.load %arg3[%c0_20, %c0_21] : memref<1x1xf32, #tpu.memory_space<vmem>>, vector<1x1xf32>
      %c0_22 = arith.constant 0 : index
      %c0_23 = arith.constant 0 : index
      %51 = vector.load %arg2[%c0_22, %c0_23] : memref<1x1xf32, #tpu.memory_space<vmem>>, vector<1x1xf32>
      tpu.vector_store %arg2[%c0_22, %c0_23], %50 {strides = array<i32>} : memref<1x1xf32, #tpu.memory_space<vmem>>, vector<1x1xf32>,
    } else {
    }
    return
  }
  func.func @transform_0(%arg0: i32) -> (i32, i32) {
    %c0_i32 = arith.constant 0 : i32
    %c0_i32_0 = arith.constant 0 : i32
    return %arg0, %c0_i32 : i32, i32
  }
  func.func @transform_1(%arg0: i32) -> (i32, i32) {
    %c0_i32 = arith.constant 0 : i32
    %c0_i32_0 = arith.constant 0 : i32
    %c0_i32_1 = arith.constant 0 : i32
    return %c0_i32, %c0_i32_0 : i32, i32
  }
}

</mosaic_0001>

<bundles_post_ra>
// kernel: tpu_custom_call.1
= control target key start
LH: loop header
LB: loop body
LE: loop exit
PB: predicated region body
PF: predicated region fallthrough
CT: control target
= control target key end

     0   :  { %6 = vsyncpa [#allocation5], 0  ;;  %s270_s0 = inlined_call_operand.hbm [shape: f32[16,16], index: 0, kind: input, shape index: {}]   ;;  %s271_s1 = inlined_call_operand.hbm [shape: f32[1,1], index: 1, kind: output, shape index: {}]  }
   0x1   :  { %7 = vsyncpa [#allocation6], 0  ;;  %s222_s6 = smov [#allocation4]   ;;  %s174_s10 = scalar_lea.hbm %s270_s0, 256 }
   0x2   :  { %s13_s7 = sshll.u32 %s222_s6, 4  ;;  %p175_p0 = scmp.ne.s32.totalorder %s270_s0, %s174_s10  ;;  %s14_s7 = int_to_ptr.vmem [resolvable:$true] %s13_s7 }
   0x3   :  { %p178_p1 = scmp.lt.u32.totalorder %s174_s10, %s270_s0 }
   0x5   :  { %p180_p2 = pnand %p178_p1, %p175_p0 }
   0x7   :  { %183 = shalt.err (!%p180_p2)
}
   0x8   :  { %s184_s15 = scalar_lea.vmem %s14_s7, 256  ;;  %p189_p4 = scmp.lt.s32.totalorder %s14_s7, %s14_s7 }
   0x9   :  { %p185_p3 = scmp.ne.s32.totalorder %s14_s7, %s184_s15  ;;  %p190_p5 = scmp.lt.s32.totalorder %s184_s15, %s184_s15 }
   0xb   :  { %p191_p6 = por %p190_p5, %p189_p4 }
   0xd   :  { %p192_p7 = pnand %p191_p6, %p185_p3 }
   0xf   :  { %195 = shalt.err (!%p192_p7)
}
  0x10   :  { %s223_s16 = smov 128   ;;  %s224_s17 = smov 8  }
  0x11   :  { %19 = dma.hbm_to_vmem [thread:$0]  %s270_s0, 256, %s14_s7, [#allocation5], %s223_s16, %s223_s16, %s224_s17  }
  0x12   :  { %218 = dma.done.wait [#allocation5], 256  }
  0x13   :  { %219 = vsyncadd [#allocation5], 4294967040  ;;  %v29_v0 = vld [vmem:[#allocation4] sm:$0xff]  ;;  %v30_v1 = vld [vmem:[#allocation4 + $0x8] sm:$0xff]  ;;  %s225_s20 = smov 16   ;;  %vm63_vm0 = vcmask 1047680   ;;  %v55_v10 = vlaneseq }
  0x14   :  { %64 = vrot.lane.b32.xlu0 %v29_v0, %s225_s20  ;;  %s226_s21 = smov 127   ;;  %v86_v12 = vrot.slane %v29_v0, 1  ;;  %v87_v13 = vrot.slane %v30_v1, 1  ;;  %vm99_vm3 = vcmask 130048   ;;  %vm27_vm5 = vcmask 0   ;;  %s228_s23 = smov [#allocation7]  }
  0x15   :  { %v59_v11 = vshrl.u32 %v55_v10, 7  ;;  %v56_v25 = vand.u32 127, %v55_v10  ;;  %v227_v37 = vmov 0.0   ;;  %s154_s24 = sshll.u32 %s228_s23, 4  ;;  %s155_s24 = int_to_ptr.vmem [resolvable:$true] %s154_s24 }
  0x16   :  { %28 = vst.msk [vmem:[#allocation2] sm:$0x1] %vm27_vm5, %v227_v37  ;;  %s196_s25 = scalar_lea.vmem %s155_s24, 16  ;;  %s200_s26 = scalar_lea.vmem %s155_s24, 32 }
  0x17   :  { %vm88_vm1 = vcmp.lt.s32.totalorder %v59_v11, 7  ;;  %v60_v17 = vadd.s32 8, %v59_v11  ;;  %vm57_vm4 = vcmp.lt.s32.totalorder %v56_v25, 15  ;;  %p197_p8 = scmp.ne.s32.totalorder %s155_s24, %s196_s25  ;;  %p201_p9 = scmp.lt.s32.totalorder %s155_s24, %s155_s24 }
  0x18   :  { %67 = vrot.lane.b32.xlu0 %v30_v1, %s225_s20  ;;  %v90_v14 = vsel %vm88_vm1, %v87_v13, %v86_v12  ;;  %v89_v15 = vsel %vm88_vm1, %v86_v12, %v87_v13  ;;  %p202_p10 = scmp.lt.s32.totalorder %s200_s26, %s196_s25 }
  0x19   :  { %v92_v16 = vsub.f32 %v30_v1, %v90_v14  ;;  %v91_v18 = vsub.f32 %v29_v0, %v89_v15  ;;  %vm62_vm2 = vcmp.lt.s32.totalorder %v60_v17, 15 }
  0x1a   :  { %p203_p11 = por %p202_p10, %p201_p9 }
  0x1b   :  { %v114_v19 = vmul.f32 %v92_v16, %v92_v16  ;;  %v113_v20 = vmul.f32 %v91_v18, %v91_v18 }
  0x1c   :  { %p204_p12 = pnand %p203_p11, %p197_p8 }
  0x1d   :  { %v120_v21 = vsel %vm62_vm2, %v114_v19, 0.0  ;;  %v121_v22 = vsel %vm99_vm3, %v113_v20, 0.0  ;;  %v134_v53 = vld [vmem:[#allocation2] sm:$0x1] }
  0x1e   :  { %v122_v23 = vsel %vm99_vm3, %v120_v21, 0.0 }
  0x1f   :  { %v123_v24 = vadd.f32 %v122_v23, %v121_v22 }
  0x86   :  { %v65_v2 = vpop.permute.xlu0 %64 }
  0x87   :  { %v66_v3 = vsel %vm63_vm0, %v65_v2, %v29_v0 }
  0x88   :  { %70 = vrot.lane.b32.xlu1 %v66_v3, %s225_s20 }
  0x8a   :  { %v68_v4 = vpop.permute.xlu0 %67 }
  0x8b   :  { %v69_v5 = vsel %vm63_vm0, %v68_v4, %v30_v1 }
  0x8c   :  { %72 = vrot.lane.b32.xlu1 %v69_v5, %s225_s20 }
  0xfa   :  { %v71_v6 = vpop.permute.xlu1 %70 }
  0xfb   :  { %v74_v7 = vsel %vm63_vm0, %v71_v6, %v29_v0 }
  0xfc   :  { %78 = vrot.lane.b32.xlu0 %v74_v7, %s226_s21 }
  0xfe   :  { %v73_v8 = vpop.permute.xlu1 %72 }
  0xff   :  { %v75_v9 = vsel %vm63_vm0, %v73_v8, %v30_v1 }
 0x100   :  { %80 = vrot.lane.b32.xlu1 %v75_v9, %s226_s21 }
 0x124   :  { %124 = vadd.xlane.f32.xlu1 %v123_v24 }
 0x16e   :  { %v79_v26 = vpop.permute.xlu0 %78 }
 0x16f   :  { %v84_v27 = vsub.f32 %v29_v0, %v79_v26 }
 0x171   :  { %v93_v28 = vmul.f32 %v84_v27, %v84_v27 }
 0x172   :  { %v81_v29 = vpop.permute.xlu1 %80 }
 0x173   :  { %v85_v30 = vsub.f32 %v30_v1, %v81_v29  ;;  %v97_v31 = vsel %vm57_vm4, %v93_v28, 0.0 }
 0x174   :  { %v100_v34 = vsel %vm99_vm3, %v97_v31, 0.0 }
 0x175   :  { %v94_v32 = vmul.f32 %v85_v30, %v85_v30 }
 0x177   :  { %v98_v33 = vsel %vm57_vm4, %v94_v32, 0.0 }
 0x178   :  { %v101_v35 = vsel %vm99_vm3, %v98_v33, 0.0 }
 0x179   :  { %v102_v36 = vadd.f32 %v101_v35, %v100_v34 }
 0x17b   :  { %103 = vadd.xlane.f32.xlu0 %v102_v36 }
 0x1b1   :  { %v125_v38 = vpop.xlane.xlu1 %124 }
 0x1b2   :  { %v126_v39 = vrot.slane %v125_v38, 4 }
 0x1b4   :  { %v127_v40 = vadd.f32 %v126_v39, %v125_v38 }
 0x1b6   :  { %v128_v41 = vrot.slane %v127_v40, 2 }
 0x1b8   :  { %v129_v45 = vadd.f32 %v128_v41, %v127_v40 }
 0x1ba   :  { %v130_v48 = vrot.slane %v129_v45, 1 }
 0x1bc   :  { %v131_v51 = vadd.f32 %v130_v48, %v129_v45 }
 0x208   :  { %v104_v42 = vpop.xlane.xlu0 %103 }
 0x209   :  { %v105_v43 = vrot.slane %v104_v42, 4 }
 0x20b   :  { %v106_v44 = vadd.f32 %v105_v43, %v104_v42 }
 0x20d   :  { %v107_v46 = vrot.slane %v106_v44, 2 }
 0x20f   :  { %v108_v47 = vadd.f32 %v107_v46, %v106_v44 }
 0x211   :  { %v109_v49 = vrot.slane %v108_v47, 1 }
 0x213   :  { %v110_v50 = vadd.f32 %v109_v49, %v108_v47 }
 0x215   :  { %163 = vpush %v110_v50 }
 0x216   :  { %165 = vpush %v131_v51 }
 0x246   :  { %s164_s0 = spop %163 }
 0x247   :  { %v112_v52 = vstv %s164_s0  ;;  %s166_s22 = spop %165 }
 0x248   :  { %v135_v54 = vmul.f32 0.004166667, %v112_v52  ;;  %v133_v55 = vstv %s166_s22 }
 0x249   :  { %v137_v57 = vmul.f32 0.004166667, %v133_v55 }
 0x24a   :  { %v136_v56 = vadd.f32 %v135_v54, %v134_v53 }
 0x24c   :  { %v138_v58 = vadd.f32 %v137_v57, %v136_v56 }
 0x24e   :  { %140 = vst.msk [vmem:[#allocation2] sm:$0x1] %vm27_vm5, %v138_v58 }
 0x255   :  { %v146_v59 = vld [vmem:[#allocation2] sm:$0x1] }
 0x256   :  { %147 = vst.msk [vmem:[#allocation7] sm:$0x1] %vm27_vm5, %v146_v59 }
 0x257   :  { %207 = shalt.err (!%p204_p12)
}
 0x258   :  { %s208_s29 = scalar_lea.hbm %s271_s1, 16 }
 0x259   :  { %p209_p13 = scmp.ne.s32.totalorder %s271_s1, %s208_s29  ;;  %p212_p0 = scmp.lt.u32.totalorder %s208_s29, %s271_s1 }
 0x25b   :  { %p214_p1 = pnand %p212_p0, %p209_p13 }
 0x25d   :  { %217 = shalt.err (!%p214_p1)
}
 0x25e   :  { %157 = dma.vmem_to_hbm [thread:$0]  %s155_s24, 16, %s271_s1, [#allocation6]  }
 0x25f   :  { %220 = dma.done.wait [#allocation6], 16  }
 0x260   :  { %221 = vsyncadd [#allocation6], 4294967280 }
 0x261   :  { %161 = vsyncpa [#allocation5], 1 }
 0x262   :  { %162 = vsyncpa [#allocation6], 1 }

</bundles_post_ra>
